<compile_context>
chip_gen: v5e
topology: v5e:2x2
jax: 0.10.0
libtpu: 0.0.40
codegen_flags: <defaults>
</compile_context>

<pallas_src>
import jax
import jax.numpy as jnp
from jax.experimental import pallas as pl
from jax.experimental.pallas import tpu as pltpu


def attention_kernel(z_ref, w1_ref, b1_ref, w2_ref, o_ref):
    """One (TN batch rows) tile of the attention forward pass.

    z_ref  : (M, TN, D) bf16  view-major slab of z (contiguous per-view reads)
    w1_ref : (D, H)     bf16  first projection weight
    b1_ref : (1, H)     f32   first projection bias
    w2_ref : (1, H)     f32   score vector (W2 weight row)
    o_ref  : (TN, D)    f32   attention-pooled output
    """
    M = z_ref.shape[0]

    # Hoisted once (broadcast_in_dim is not CSE'd inside the per-view loop).
    w1v = w1_ref[...]
    b1v = b1_ref[...]
    w2v = w2_ref[...]

    # (1)+(2) per-view hidden projection + score.  The (TN, H) hidden tile
    # lives only in vregs -> no lane-padded (R, H->128) VMEM scratch and no
    # extra vst/vld pass.  bf16 MXU matmul, f32 accumulation; tanh on the EUP;
    # the H->1 reduction runs on the VPU/XLU (no lane-width-1 MXU matmul).
    s_cols = []
    for m in range(M):                                        # M small & static
        h_m = jnp.dot(z_ref[m], w1v,
                      preferred_element_type=jnp.float32)     # (TN, H) f32
        h_m = jnp.tanh(h_m + b1v)
        s_cols.append(jnp.sum(h_m * w2v, axis=-1, keepdims=True))   # (TN, 1)

    # (3) softmax over the views axis, kept as M (TN, 1) f32 columns.
    s_max = s_cols[0]
    for c in s_cols[1:]:
        s_max = jnp.maximum(s_max, c)
    e_cols = [jnp.exp(c - s_max) for c in s_cols]
    denom = e_cols[0]
    for c in e_cols[1:]:
        denom = denom + c
    inv = pl.reciprocal(denom, approx=True)                   # EUP slot, ~free

    # (4) attention-weighted sum of views.  bf16 z * f32 beta column promotes
    # to f32 automatically -- no explicit full-width converts.
    acc = (e_cols[0] * inv) * z_ref[0]
    for m in range(1, M):
        acc = acc + (e_cols[m] * inv) * z_ref[m]
    o_ref[...] = acc.astype(o_ref.dtype)


def _vmem_capacity_bytes(default=64 << 20):
    """Physical VMEM of the current generation; conservative (v7x) fallback."""
    try:
        return int(pltpu.get_tpu_info().vmem_capacity_bytes)
    except Exception:
        return default


def _choose_tn(N, M, D, itemsize, target_block_bytes, min_steps=4):
    """Batch rows per block: multiple of 8 dividing N, z block ~target size,
    and (when possible) >= min_steps grid steps so each v7x TensorCore gets
    >= 2 steps and the double buffer actually overlaps DMA with compute."""
    row_bytes = M * D * itemsize
    max_tn = max(8, target_block_bytes // row_bytes)
    divisors = [t for t in range(8, N + 1, 8) if N % t == 0]
    if not divisors:
        return N                       # tiny / odd N: single full block
    for steps in (min_steps, 2, 1):
        pref = [t for t in divisors if t <= max_tn and t * steps <= N]
        if pref:
            return max(pref)
    return min(divisors)


def attention_forward(z, w1, b1, w2, *, tn=None):
    """z: (N, M, D), w1: (D, H), b1: (H,), w2: (1, H) or (H, 1) -> (N, D)."""
    N, M, D = z.shape
    H = w1.shape[1]
    out_dtype = z.dtype

    # Lane-dense output: pad the feature dim to a multiple of 128 so the
    # (tn, D) output block emits unmasked vst (padded columns sliced off).
    D_pad = int(pl.cdiv(D, 128) * 128)

    # Stream z as bf16 (halves HBM traffic; the kernel is bandwidth bound) in
    # view-major (M, N, D) layout so every per-view read inside the kernel is
    # a contiguous (TN, D) slab -- no strided sublane gathers on packed bf16.
    zv = jnp.transpose(z, (1, 0, 2)).astype(jnp.bfloat16)           # (M, N, D)
    w1_k = w1.astype(jnp.bfloat16)
    if D_pad != D:
        zv = jnp.pad(zv, ((0, 0), (0, 0), (0, D_pad - D)))
        w1_k = jnp.pad(w1_k, ((0, D_pad - D), (0, 0)))
    b1_row = b1.reshape(1, H).astype(jnp.float32)
    w2_row = w2.reshape(1, H).astype(jnp.float32)

    # Generation-aware tiling / VMEM budget (v5e/v6e: 128 MiB, v7x: 64 MiB).
    big_vmem = _vmem_capacity_bytes() >= (100 << 20)
    target_block_bytes = (16 << 20) if big_vmem else (4 << 20)
    vmem_cap = (96 << 20) if big_vmem else (48 << 20)

    if tn is None:
        tn = _choose_tn(N, M, D_pad, 2, target_block_bytes)   # bf16 itemsize
    assert N % tn == 0, "tn must divide N"

    # VMEM budget: double-buffered in/out blocks + (padded) weights + headroom.
    z_blk = M * tn * D_pad * 2
    o_blk = tn * D_pad * 4
    w_blk = D_pad * 128 * 2 + 2 * 8 * 128 * 4
    vmem_limit = int(min(max(2 * (z_blk + o_blk) + w_blk + (8 << 20),
                             32 << 20), vmem_cap))

    out = pl.pallas_call(
        attention_kernel,
        out_shape=jax.ShapeDtypeStruct((N, D_pad), jnp.float32),
        grid_spec=pltpu.PrefetchScalarGridSpec(
            num_scalar_prefetch=0,
            grid=(N // tn,),
            in_specs=[
                pl.BlockSpec((M, tn, D_pad), lambda i: (0, i, 0)),  # z (view-major)
                pl.BlockSpec((D_pad, H), lambda i: (0, 0)),         # W1
                pl.BlockSpec((1, H), lambda i: (0, 0)),             # b1
                pl.BlockSpec((1, H), lambda i: (0, 0)),             # W2 row
            ],
            out_specs=pl.BlockSpec((tn, D_pad), lambda i: (i, 0)),
        ),
        compiler_params=pltpu.CompilerParams(
            dimension_semantics=("parallel",),
            vmem_limit_bytes=vmem_limit,
        ),
    )(zv, w1_k, b1_row, w2_row)

    out = out.astype(out_dtype)
    if D_pad != D:
        out = out[:, :D]
    return out


def attention_reference(z, w1, b1, w2):
    w = jnp.tanh(jnp.einsum("nmd,dh->nmh", z, w1) + b1.reshape(1, 1, -1))
    s = jnp.einsum("nmh,h->nm", w, w2.reshape(-1))
    beta = jax.nn.softmax(s, axis=1)
    return jnp.sum(beta[:, :, None] * z, axis=1)


if __name__ == "__main__":
    # Small shapes consistent with the module: N batch rows, M "views",
    # D = in_size features, H = hidden_size of the attention MLP.
    N, M, D, H = 64, 4, 128, 16

    key = jax.random.PRNGKey(0)
    kz, kw1, kb1, kw2 = jax.random.split(key, 4)

    z = jax.random.normal(kz, (N, M, D), dtype=jnp.float32)

    # Deterministic init mimicking nn.Linear's uniform(-1/sqrt(fan_in), ...).
    bound1 = 1.0 / (D ** 0.5)
    w1 = jax.random.uniform(kw1, (D, H), jnp.float32, -bound1, bound1)
    b1 = jax.random.uniform(kb1, (H,), jnp.float32, -bound1, bound1)
    bound2 = 1.0 / (H ** 0.5)
    w2 = jax.random.uniform(kw2, (1, H), jnp.float32, -bound2, bound2)

    out = attention_forward(z, w1, b1, w2)
    out = jax.block_until_ready(out)

    ref = attention_reference(z, w1, b1, w2)
    assert out.shape == (N, D)
    # bf16-streamed z + bf16 MXU operands (f32 accumulation) + approx softmax
    # reciprocal -> relax tolerance vs the f32 reference.
    assert jnp.allclose(out, ref, atol=3e-2, rtol=3e-2), "mismatch vs reference"

    print("KERNEL_OK")
</pallas_src>

<mosaic_0001>
module attributes {stable_mosaic.version = 11 : i64} {
  func.func @attention_kernel(%arg0: i32, %arg1: memref<4x16x128xbf16, #tpu.memory_space<vmem>>, %arg2: memref<128x16xbf16, #tpu.memory_space<vmem>>, %arg3: memref<1x16xf32, #tpu.memory_space<vmem>>, %arg4: memref<1x16xf32, #tpu.memory_space<vmem>>, %arg5: memref<16x128xf32, #tpu.memory_space<vmem>>) attributes {dimension_semantics = [#tpu.dimension_semantics<parallel>], iteration_bounds = array<i64: 4>, scalar_prefetch = 0 : i64, scratch_operands = 0 : i64, tpu.core_type = #tpu.core_type<tc>, window_params = [{transform_indices = @transform_0, window_bounds = array<i64: 4, 16, 128>}, {pipeline_mode = #tpu.pipeline_mode<synchronous>, transform_indices = @transform_1, window_bounds = array<i64: 128, 16>}, {pipeline_mode = #tpu.pipeline_mode<synchronous>, transform_indices = @transform_2, window_bounds = array<i64: 1, 16>}, {pipeline_mode = #tpu.pipeline_mode<synchronous>, transform_indices = @transform_3, window_bounds = array<i64: 1, 16>}, {transform_indices = @transform_4, window_bounds = array<i64: 16, 128>}]} {
    %c0 = arith.constant 0 : index
    %c0_0 = arith.constant 0 : index
    %0 = vector.load %arg2[%c0, %c0_0] : memref<128x16xbf16, #tpu.memory_space<vmem>>, vector<128x16xbf16>
    %c0_1 = arith.constant 0 : index
    %c0_2 = arith.constant 0 : index
    %1 = vector.load %arg3[%c0_1, %c0_2] : memref<1x16xf32, #tpu.memory_space<vmem>>, vector<1x16xf32>
    %c0_3 = arith.constant 0 : index
    %c0_4 = arith.constant 0 : index
    %2 = vector.load %arg4[%c0_3, %c0_4] : memref<1x16xf32, #tpu.memory_space<vmem>>, vector<1x16xf32>
    %c0_5 = arith.constant 0 : index
    %c0_6 = arith.constant 0 : index
    %c0_7 = arith.constant 0 : index
    %3 = vector.load %arg1[%c0_5, %c0_6, %c0_7] : memref<4x16x128xbf16, #tpu.memory_space<vmem>>, vector<1x16x128xbf16>
    %4 = vector.shape_cast %3 : vector<1x16x128xbf16> to vector<16x128xbf16>
    %cst = arith.constant dense<0.000000e+00> : vector<16x16xf32>
    %5 = tpu.matmul %4, %0, %cst {dimension_numbers = #tpu.dot_dimension_numbers<[1], [0], [0], [1], [0, 0, 1, 1], [], []>} : vector<16x128xbf16>, vector<128x16xbf16>, vector<16x16xf32> -> vector<16x16xf32>
    %6 = vector.broadcast %1 : vector<1x16xf32> to vector<16x16xf32>
    %7 = arith.addf %5, %6 : vector<16x16xf32>
    %8 = math.tanh %7 : vector<16x16xf32>
    %9 = vector.broadcast %2 : vector<1x16xf32> to vector<16x16xf32>
    %10 = arith.mulf %8, %9 : vector<16x16xf32>
    %cst_8 = arith.constant dense<0.000000e+00> : vector<16xf32>
    %11 = vector.multi_reduction <add>, %10, %cst_8 [1] : vector<16x16xf32> to vector<16xf32>
    %12 = vector.shape_cast %11 : vector<16xf32> to vector<16x1xf32>
    %c1 = arith.constant 1 : index
    %c0_9 = arith.constant 0 : index
    %c0_10 = arith.constant 0 : index
    %13 = vector.load %arg1[%c1, %c0_9, %c0_10] : memref<4x16x128xbf16, #tpu.memory_space<vmem>>, vector<1x16x128xbf16>
    %14 = vector.shape_cast %13 : vector<1x16x128xbf16> to vector<16x128xbf16>
    %cst_11 = arith.constant dense<0.000000e+00> : vector<16x16xf32>
    %15 = tpu.matmul %14, %0, %cst_11 {dimension_numbers = #tpu.dot_dimension_numbers<[1], [0], [0], [1], [0, 0, 1, 1], [], []>} : vector<16x128xbf16>, vector<128x16xbf16>, vector<16x16xf32> -> vector<16x16xf32>
    %16 = vector.broadcast %1 : vector<1x16xf32> to vector<16x16xf32>
    %17 = arith.addf %15, %16 : vector<16x16xf32>
    %18 = math.tanh %17 : vector<16x16xf32>
    %19 = vector.broadcast %2 : vector<1x16xf32> to vector<16x16xf32>
    %20 = arith.mulf %18, %19 : vector<16x16xf32>
    %cst_12 = arith.constant dense<0.000000e+00> : vector<16xf32>
    %21 = vector.multi_reduction <add>, %20, %cst_12 [1] : vector<16x16xf32> to vector<16xf32>
    %22 = vector.shape_cast %21 : vector<16xf32> to vector<16x1xf32>
    %c2 = arith.constant 2 : index
    %c0_13 = arith.constant 0 : index
    %c0_14 = arith.constant 0 : index
    %23 = vector.load %arg1[%c2, %c0_13, %c0_14] : memref<4x16x128xbf16, #tpu.memory_space<vmem>>, vector<1x16x128xbf16>
    %24 = vector.shape_cast %23 : vector<1x16x128xbf16> to vector<16x128xbf16>
    %cst_15 = arith.constant dense<0.000000e+00> : vector<16x16xf32>
    %25 = tpu.matmul %24, %0, %cst_15 {dimension_numbers = #tpu.dot_dimension_numbers<[1], [0], [0], [1], [0, 0, 1, 1], [], []>} : vector<16x128xbf16>, vector<128x16xbf16>, vector<16x16xf32> -> vector<16x16xf32>
    %26 = vector.broadcast %1 : vector<1x16xf32> to vector<16x16xf32>
    %27 = arith.addf %25, %26 : vector<16x16xf32>
    %28 = math.tanh %27 : vector<16x16xf32>
    %29 = vector.broadcast %2 : vector<1x16xf32> to vector<16x16xf32>
    %30 = arith.mulf %28, %29 : vector<16x16xf32>
    %cst_16 = arith.constant dense<0.000000e+00> : vector<16xf32>
    %31 = vector.multi_reduction <add>, %30, %cst_16 [1] : vector<16x16xf32> to vector<16xf32>
    %32 = vector.shape_cast %31 : vector<16xf32> to vector<16x1xf32>
    %c3 = arith.constant 3 : index
    %c0_17 = arith.constant 0 : index
    %c0_18 = arith.constant 0 : index
    %33 = vector.load %arg1[%c3, %c0_17, %c0_18] : memref<4x16x128xbf16, #tpu.memory_space<vmem>>, vector<1x16x128xbf16>
    %34 = vector.shape_cast %33 : vector<1x16x128xbf16> to vector<16x128xbf16>
    %cst_19 = arith.constant dense<0.000000e+00> : vector<16x16xf32>
    %35 = tpu.matmul %34, %0, %cst_19 {dimension_numbers = #tpu.dot_dimension_numbers<[1], [0], [0], [1], [0, 0, 1, 1], [], []>} : vector<16x128xbf16>, vector<128x16xbf16>, vector<16x16xf32> -> vector<16x16xf32>
    %36 = vector.broadcast %1 : vector<1x16xf32> to vector<16x16xf32>
    %37 = arith.addf %35, %36 : vector<16x16xf32>
    %38 = math.tanh %37 : vector<16x16xf32>
    %39 = vector.broadcast %2 : vector<1x16xf32> to vector<16x16xf32>
    %40 = arith.mulf %38, %39 : vector<16x16xf32>
    %cst_20 = arith.constant dense<0.000000e+00> : vector<16xf32>
    %41 = vector.multi_reduction <add>, %40, %cst_20 [1] : vector<16x16xf32> to vector<16xf32>
    %42 = vector.shape_cast %41 : vector<16xf32> to vector<16x1xf32>
    %43 = arith.maximumf %12, %22 : vector<16x1xf32>
    %44 = arith.maximumf %43, %32 : vector<16x1xf32>
    %45 = arith.maximumf %44, %42 : vector<16x1xf32>
    %46 = arith.subf %12, %45 : vector<16x1xf32>
    %47 = math.exp %46 : vector<16x1xf32>
    %48 = arith.subf %22, %45 : vector<16x1xf32>
    %49 = math.exp %48 : vector<16x1xf32>
    %50 = arith.subf %32, %45 : vector<16x1xf32>
    %51 = math.exp %50 : vector<16x1xf32>
    %52 = arith.subf %42, %45 : vector<16x1xf32>
    %53 = math.exp %52 : vector<16x1xf32>
    %54 = arith.addf %47, %49 : vector<16x1xf32>
    %55 = arith.addf %54, %51 : vector<16x1xf32>
    %56 = arith.addf %55, %53 : vector<16x1xf32>
    %57 = tpu.reciprocal %56 {approx = true} : vector<16x1xf32> -> vector<16x1xf32>
    %58 = arith.mulf %47, %57 : vector<16x1xf32>
    %c0_21 = arith.constant 0 : index
    %c0_22 = arith.constant 0 : index
    %c0_23 = arith.constant 0 : index
    %59 = vector.load %arg1[%c0_21, %c0_22, %c0_23] : memref<4x16x128xbf16, #tpu.memory_space<vmem>>, vector<1x16x128xbf16>
    %60 = vector.shape_cast %59 : vector<1x16x128xbf16> to vector<16x128xbf16>
    %61 = arith.extf %60 : vector<16x128xbf16> to vector<16x128xf32>
    %62 = vector.broadcast %58 : vector<16x1xf32> to vector<16x128xf32>
    %63 = arith.mulf %62, %61 : vector<16x128xf32>
    %64 = arith.mulf %49, %57 : vector<16x1xf32>
    %c1_24 = arith.constant 1 : index
    %c0_25 = arith.constant 0 : index
    %c0_26 = arith.constant 0 : index
    %65 = vector.load %arg1[%c1_24, %c0_25, %c0_26] : memref<4x16x128xbf16, #tpu.memory_space<vmem>>, vector<1x16x128xbf16>
    %66 = vector.shape_cast %65 : vector<1x16x128xbf16> to vector<16x128xbf16>
    %67 = arith.extf %66 : vector<16x128xbf16> to vector<16x128xf32>
    %68 = vector.broadcast %64 : vector<16x1xf32> to vector<16x128xf32>
    %69 = arith.mulf %68, %67 : vector<16x128xf32>
    %70 = arith.addf %63, %69 : vector<16x128xf32>
    %71 = arith.mulf %51, %57 : vector<16x1xf32>
    %c2_27 = arith.constant 2 : index
    %c0_28 = arith.constant 0 : index
    %c0_29 = arith.constant 0 : index
    %72 = vector.load %arg1[%c2_27, %c0_28, %c0_29] : memref<4x16x128xbf16, #tpu.memory_space<vmem>>, vector<1x16x128xbf16>
    %73 = vector.shape_cast %72 : vector<1x16x128xbf16> to vector<16x128xbf16>
    %74 = arith.extf %73 : vector<16x128xbf16> to vector<16x128xf32>
    %75 = vector.broadcast %71 : vector<16x1xf32> to vector<16x128xf32>
    %76 = arith.mulf %75, %74 : vector<16x128xf32>
    %77 = arith.addf %70, %76 : vector<16x128xf32>
    %78 = arith.mulf %53, %57 : vector<16x1xf32>
    %c3_30 = arith.constant 3 : index
    %c0_31 = arith.constant 0 : index
    %c0_32 = arith.constant 0 : index
    %79 = vector.load %arg1[%c3_30, %c0_31, %c0_32] : memref<4x16x128xbf16, #tpu.memory_space<vmem>>, vector<1x16x128xbf16>
    %80 = vector.shape_cast %79 : vector<1x16x128xbf16> to vector<16x128xbf16>
    %81 = arith.extf %80 : vector<16x128xbf16> to vector<16x128xf32>
    %82 = vector.broadcast %78 : vector<16x1xf32> to vector<16x128xf32>
    %83 = arith.mulf %82, %81 : vector<16x128xf32>
    %84 = arith.addf %77, %83 : vector<16x128xf32>
    %c0_33 = arith.constant 0 : index
    %c0_34 = arith.constant 0 : index
    %85 = vector.load %arg5[%c0_33, %c0_34] : memref<16x128xf32, #tpu.memory_space<vmem>>, vector<16x128xf32>
    tpu.vector_store %arg5[%c0_33, %c0_34], %84 {strides = array<i32>} : memref<16x128xf32, #tpu.memory_space<vmem>>, vector<16x128xf32>,
    return
  }
  func.func @transform_0(%arg0: i32) -> (i32, i32, i32) {
    %c0_i32 = arith.constant 0 : i32
    %c0_i32_0 = arith.constant 0 : i32
    %c0_i32_1 = arith.constant 0 : i32
    return %c0_i32, %arg0, %c0_i32_0 : i32, i32, i32
  }
  func.func @transform_1(%arg0: i32) -> (i32, i32) {
    %c0_i32 = arith.constant 0 : i32
    %c0_i32_0 = arith.constant 0 : i32
    %c0_i32_1 = arith.constant 0 : i32
    return %c0_i32, %c0_i32_0 : i32, i32
  }
  func.func @transform_2(%arg0: i32) -> (i32, i32) {
    %c0_i32 = arith.constant 0 : i32
    %c0_i32_0 = arith.constant 0 : i32
    %c0_i32_1 = arith.constant 0 : i32
    return %c0_i32, %c0_i32_0 : i32, i32
  }
  func.func @transform_3(%arg0: i32) -> (i32, i32) {
    %c0_i32 = arith.constant 0 : i32
    %c0_i32_0 = arith.constant 0 : i32
    %c0_i32_1 = arith.constant 0 : i32
    return %c0_i32, %c0_i32_0 : i32, i32
  }
  func.func @transform_4(%arg0: i32) -> (i32, i32) {
    %c0_i32 = arith.constant 0 : i32
    %c0_i32_0 = arith.constant 0 : i32
    return %arg0, %c0_i32 : i32, i32
  }
}

</mosaic_0001>

<bundles_post_ra>
// kernel: tpu_custom_call.1
= control target key start
LH: loop header
LB: loop body
LE: loop exit
PB: predicated region body
PF: predicated region fallthrough
CT: control target
= control target key end

     0   :  { %9 = vsyncpa [#allocation3], 0  ;;  %s1058_s0 = inlined_call_operand.hbm [shape: bf16[4,64,128], index: 0, kind: input, shape index: {}]   ;;  %s1059_s1 = inlined_call_operand.vmem [shape: bf16[128,16], index: 1, kind: input, shape index: {}]   ;;  %s1060_s2 = inlined_call_operand.vmem [shape: f32[1,16], index: 2, kind: input, shape index: {}]   ;;  %s1061_s3 = inlined_call_operand.vmem [shape: f32[1,16], index: 3, kind: input, shape index: {}]   ;;  %s1062_s4 = inlined_call_operand.hbm [shape: f32[64,128], index: 4, kind: output, shape index: {}]  }
   0x1   :  { %11 = vsyncpa [#allocation3 + $0x1], 0 }
   0x2   :  { %12 = vsyncpa [#allocation4], 0 }
   0x3   :  { %14 = vsyncpa [#allocation4 + $0x1], 0  ;;  %s887_s15 = smov 0   ;;  %s889_s16 = smov 0  }
   0x4   :  { %s891_s17 = smov 0   ;;  %s893_s18 = smov 0  }
   0x5 LB: > { %s908_s19 = sadd.s32 4294967295, %s852_s18   ;;  %s608_s20 = sadd.s32 4294967294, %s852_s18   ;;  %s852_s18 = sphi %s893_s18, %s1070_s18   ;;  %s848_s17 = sphi %s891_s17, %s1069_s17   ;;  %s844_s16 = sphi %s889_s16, %s1068_s16   ;;  %s840_s15 = sphi %s887_s15, %s1067_s15  }
   0x6   : > { %s912_s21 = sadd.s32 1, %s852_s18   ;;  %s27_s22 = sadd.s32 1, %s848_s17 }
   0x7   : > { %s24_s23 = ssub.s32 %s852_s18, %s912_s21  ;;  %p34_p0 = scmp.ne.s32.totalorder %s848_s17, %s844_s16 }
   0x8   : > { %p25_p1 = scmp.eq.s32.totalorder %s24_s23, 0  ;;  %p35_p2 = scmp.eq.s32.totalorder %s852_s18, 0 }
   0x9   : > { %p40_p3 = scmp.ne.s32.totalorder %s844_s16, %s840_s15  ;;  %p41_p4 = scmp.eq.s32.totalorder %s908_s19, 0 }
   0xa   : > { %s924_s24 = scalar_select %p25_p1, %s848_s17, %s27_s22  }
   0xb   : > { %p926_p5 = por %p35_p2, %p34_p0  ;;  %p930_p6 = por %p41_p4, %p40_p3 }
   0xc   : > { %p127_p7 = scmp.eq.s32.totalorder %s908_s19, 3  ;;  %p133_p8 = scmp.eq.s32.totalorder %s608_s20, 3 }
   0xd   : > { %p610_p11 = scmp.ge.s32.totalorder %s852_s18, 4 }
   0xe   : > { %p935_p9 = por %p127_p7, %p34_p0  ;;  %p939_p10 = por %p133_p8, %p40_p3 }
   0xf   : > { %158 = sbr.rel (%p610_p11) target bundleno = 34 (0x22), region = 28 }
  0x14   : > { %s162_s29 = sand.u32 1, %s848_s17   ;;  %s678_s30 = sshll.u32 %s852_s18, 3 }
  0x15   : > { %s611_s5 = sshll.u32 %s162_s29, 5  ;;  %s171_s8 = scalar_lea.hbm %s1058_s0, %s678_s30 }
  0x16   : > { %s692_s9 = scalar_select %p926_p5, [#allocation0], [#allocation8] }
  0x17   : > { %s184_s10 = sshll.u32 %s171_s8, 4  ;;  %s166_s11 = scalar_lea.vmem [#allocation2], %s611_s5  ;;  %s185_s10 = int_to_ptr.hbm [resolvable:$true] %s184_s10 }
  0x18   : > { %s186_s12 = sshll.u32 %s166_s11, 4  ;;  %s176_s13 = sld [smem:[%s692_s9]]   ;;  %s187_s12 = int_to_ptr.vmem [resolvable:$true] %s186_s12 }
  0x19   : > { %s854_s14 = smov 512   ;;  %s855_s20 = smov 128  }
  0x1a   : > { %693 = sst [smem:[#allocation7]] (%p926_p5), %s854_s14  ;;  %s856_s22 = smov 2  }
  0x1b   : > { %694 = sst [smem:[#allocation7 + $0x1]] (%p926_p5), %s855_s20  ;;  %s857_s23 = smov 64  }
  0x1c   : > { %695 = sst [smem:[#allocation7 + $0x2]] (%p926_p5), %s856_s22  ;;  %s858_s6 = smov 4  }
  0x1d   : > { %696 = sst [smem:[#allocation7 + $0x3]] (%p926_p5), %s857_s23  ;;  %s163_s7 = scalar_lea.sflag [#allocation3], %s162_s29 }
  0x1e   : > { %s614_s30 = sshll.u32 %s176_s13, 26  ;;  %697 = sst [smem:[#allocation7 + $0x4]] (%p926_p5), %s857_s23 }
  0x1f   : > { %s615_s5 = sadd.s32 134217728, %s614_s30  ;;  %698 = sst [smem:[#allocation7 + $0x5]] (%p926_p5), %s858_s6 }
  0x20   : > { %s859_s8 = smov [#allocation6]  }
  0x21   : > { %699 = dma.general (%p926_p5), %s185_s10, 512, %s187_s12, %s163_s7, %s859_s8, [#allocation7], %s615_s5, 0  }
  0x22 PF: > { %p616_p12 = scmp.ge.s32.totalorder %s852_s18, 1  ;;  %p207_p13 = scmp.lt.s32.totalorder %s852_s18, 5 }
  0x24   : > { %p208_p0 = pnand %p616_p12, %p207_p13 }
  0x25   : > { %s968_s9 = sand.u32 (!%p208_p0), 1, %s844_s16  }
  0x26   : > { %211 = sbr.rel (%p208_p0) target bundleno = 391 (0x187), region = 36  ;;  %s617_s11 = sshll.u32 (!%p208_p0), %s968_s9, 5 }
  0x27   : > { %s214_s13 = scalar_lea.sflag (!%p208_p0), [#allocation3], %s968_s9  ;;  %s972_s14 = scalar_lea.vmem (!%p208_p0), [#allocation2], %s617_s11 }
  0x2b   : > { %831 = dma.done.wait (%p930_p6), %s214_s13, 512  }
  0x2c   : > { %833 = vsyncadd (%p930_p6), %s214_s13, 4294966784  ;;  %v686_v0 = vld [vmem:[%s1059_s1 + $0x38] sm:$0xff]  ;;  %v685_v1 = vld [vmem:[%s1059_s1 + $0x30] sm:$0xff]  ;;  %vm343_vm0 = vcmask 130048   ;;  %s618_s22 = sshll.u32 %s968_s9, 4  ;;  %s691_s26 = sshll.u32 %s908_s19, 4 }
  0x2d   : > { %322 = vmatpush.bf16.msra.mxu0 %v686_v0  ;;  %359 = vmatpush.bf16.msra.mxu1 %v686_v0  ;;  %v684_v2 = vld [vmem:[%s1059_s1 + $0x28] sm:$0xff]  ;;  %v683_v3 = vld [vmem:[%s1059_s1 + $0x20] sm:$0xff]  ;;  %v682_v4 = vld [vmem:[%s1059_s1 + $0x18] sm:$0xff]  ;;  %s531_s30 = scalar_lea.hbm %s1062_s4, %s691_s26  ;;  %s242_s19 = scalar_lea.vmem [#allocation5], %s618_s22 }
  0x2e   : > { %392 = vmatpush.bf16.msra.mxu2 %v686_v0  ;;  %425 = vmatpush.bf16.msra.mxu3 %v686_v0  ;;  %v681_v5 = vld [vmem:[%s1059_s1 + $0x10] sm:$0xff]  ;;  %v680_v6 = vld [vmem:[%s1059_s1 + $0x8] sm:$0xff]  ;;  %v679_v7 = vld [vmem:[%s1059_s1] sm:$0xff]  ;;  %s532_s5 = sshll.u32 %s242_s19, 4  ;;  %s534_s6 = sshll.u32 %s531_s30, 4  ;;  %s533_s5 = int_to_ptr.vmem [resolvable:$true] %s532_s5  ;;  %s535_s6 = int_to_ptr.hbm [resolvable:$true] %s534_s6 }
  0x2f   : > { %v687_v8 = vld [vmem:[%s972_s14] sm:$0xff]  ;;  %v688_v9 = vld [vmem:[%s972_s14 + $0x8] sm:$0xff]  ;;  %v689_v10 = vld [vmem:[%s972_s14 + $0x10] sm:$0xff]  ;;  %s520_s7 = scalar_lea.sflag [#allocation4], %s968_s9  ;;  %s800_s8 = sshra.s32 %s535_s6, 4  ;;  %s801_s8 = int_to_ptr.hbm [resolvable:$true] %s800_s8 }
  0x30   : > { %v690_v11 = vld [vmem:[%s972_s14 + $0x18] sm:$0xff]  ;;  %v748_v12 = vld [vmem:[%s1060_s2] ss:$0 sm:$0xff]  ;;  %s802_s11 = scalar_lea.hbm %s801_s8, 16  ;;  %s806_s29 = scalar_lea.hbm %s1062_s4, 64 }
  0x31   : > { %323 = vmatpush.bf16.msra.mxu0 %v685_v1  ;;  %360 = vmatpush.bf16.msra.mxu1 %v685_v1  ;;  %v749_v17 = vld [vmem:[%s1061_s3] ss:$0 sm:$0xff]  ;;  %p803_p1 = scmp.ne.s32.totalorder %s801_s8, %s802_s11  ;;  %p807_p4 = scmp.lt.s32.totalorder %s801_s8, %s1062_s4 }
  0x32   : > { %393 = vmatpush.bf16.msra.mxu2 %v685_v1  ;;  %426 = vmatpush.bf16.msra.mxu3 %v685_v1  ;;  %p808_p5 = scmp.lt.s32.totalorder %s806_s29, %s802_s11 }
  0x33   : > { %p804_p2 = pnand %p803_p1, %p935_p9 }
  0x34   : > { %p809_p6 = por %p808_p5, %p807_p4 }
  0x35   : > { %324 = vmatpush.bf16.msra.mxu0 %v684_v2  ;;  %361 = vmatpush.bf16.msra.mxu1 %v684_v2  ;;  %p805_p3 = pneg %p804_p2 }
  0x36   : > { %394 = vmatpush.bf16.msra.mxu2 %v684_v2  ;;  %427 = vmatpush.bf16.msra.mxu3 %v684_v2 }
  0x37   : > { %p810_p7 = pnand %p809_p6, %p805_p3 }
  0x39   : > { %325 = vmatpush.bf16.msra.mxu0 %v683_v3  ;;  %362 = vmatpush.bf16.msra.mxu1 %v683_v3 }
  0x3a   : > { %395 = vmatpush.bf16.msra.mxu2 %v683_v3  ;;  %428 = vmatpush.bf16.msra.mxu3 %v683_v3 }
  0x3d   : > { %326 = vmatpush.bf16.msra.mxu0 %v682_v4  ;;  %363 = vmatpush.bf16.msra.mxu1 %v682_v4 }
  0x3e   : > { %396 = vmatpush.bf16.msra.mxu2 %v682_v4  ;;  %429 = vmatpush.bf16.msra.mxu3 %v682_v4 }
  0x41   : > { %327 = vmatpush.bf16.msra.mxu0 %v681_v5  ;;  %364 = vmatpush.bf16.msra.mxu1 %v681_v5 }
  0x42   : > { %397 = vmatpush.bf16.msra.mxu2 %v681_v5  ;;  %430 = vmatpush.bf16.msra.mxu3 %v681_v5 }
  0x45   : > { %328 = vmatpush.bf16.msra.mxu0 %v680_v6  ;;  %365 = vmatpush.bf16.msra.mxu1 %v680_v6 }
  0x46   : > { %398 = vmatpush.bf16.msra.mxu2 %v680_v6  ;;  %431 = vmatpush.bf16.msra.mxu3 %v680_v6 }
  0x49   : > { %329 = vmatpush.bf16.msra.mxu0 %v679_v7  ;;  %366 = vmatpush.bf16.msra.mxu1 %v679_v7 }
  0x4a   : > { %399 = vmatpush.bf16.msra.mxu2 %v679_v7  ;;  %432 = vmatpush.bf16.msra.mxu3 %v679_v7 }
  0x4c   : > { %330 = vmatmul.bf16.vlgmr.msra.gmra.mxu0 %v687_v8  ;;  %367 = vmatmul.bf16.vlgmr.msra.gmra.mxu1 %v688_v9 }
  0x4d   : > { %400 = vmatmul.bf16.vlgmr.msra.gmra.mxu2 %v689_v10  ;;  %433 = vmatmul.bf16.vlgmr.msra.gmra.mxu3 %v690_v11 }
  0xc9   : > { %v331_v13 = vpop.f32.mrf.mxu0  ;;  %v368_v14 = vpop.f32.mrf.mxu1 }
  0xca   : > { %v332_v15 = vadd.f32 %v748_v12, %v331_v13  ;;  %v369_v16 = vadd.f32 %v748_v12, %v368_v14 }
  0xcc   : > { %750 = vtanh.f32 %v332_v15 }
  0xcd   : > { %752 = vtanh.f32 %v369_v16 }
  0xd0   : > { %v401_v18 = vpop.f32.mrf.mxu2  ;;  %v434_v19 = vpop.f32.mrf.mxu3 }
  0xd1   : > { %v402_v20 = vadd.f32 %v748_v12, %v401_v18  ;;  %v333_v21 = vpop.f32.mrf.mxu0  ;;  %v370_v22 = vpop.f32.mrf.mxu1  ;;  %v435_v29 = vadd.f32 %v748_v12, %v434_v19 }
  0xd2   : > { %v751_v23 = vpop.eup %750  ;;  %v334_v24 = vadd.f32 %v748_v12, %v333_v21  ;;  %v371_v25 = vadd.f32 %v748_v12, %v370_v22 }
  0xd3   : > { %v753_v26 = vpop.eup %752  ;;  %754 = vtanh.f32 %v402_v20  ;;  %v341_v27 = vmul.f32 %v751_v23, %v749_v17 }
  0xd4   : > { %v375_v28 = vmul.f32 %v753_v26, %v749_v17  ;;  %756 = vtanh.f32 %v334_v24 }
  0xd5   : > { %v344_v30 = vsel %vm343_vm0, %v341_v27, 0.0  ;;  %758 = vtanh.f32 %v371_v25 }
  0xd6   : > { %v377_v31 = vsel %vm343_vm0, %v375_v28, 0.0  ;;  %345 = vadd.xlane.f32.xlu0 %v344_v30  ;;  %760 = vtanh.f32 %v435_v29 }
  0xd7   : > { %378 = vadd.xlane.f32.xlu1 %v377_v31 }
  0xd8   : > { %v403_v32 = vpop.f32.mrf.mxu2  ;;  %v436_v33 = vpop.f32.mrf.mxu3 }
  0xd9   : > { %v755_v34 = vpop.eup %754  ;;  %v404_v35 = vadd.f32 %v748_v12, %v403_v32  ;;  %v437_v36 = vadd.f32 %v748_v12, %v436_v33 }
  0xda   : > { %v408_v37 = vmul.f32 %v755_v34, %v749_v17  ;;  %v757_v38 = vpop.eup %756  ;;  %v264_v34 = vld [vmem:[%s972_s14 + $0x4] sm:$0xff]  }
  0xdb   : > { %762 = vtanh.f32 %v404_v35  ;;  %v759_v39 = vpop.eup %758  ;;  %v342_v41 = vmul.f32 %v757_v38, %v749_v17  ;;  %v656_v35 = vld [vmem:[%s972_s14 + $0xc] sm:$0xff]  }
  0xdc   : > { %764 = vtanh.f32 %v437_v36  ;;  %v410_v40 = vsel %vm343_vm0, %v408_v37, 0.0  ;;  %v376_v42 = vmul.f32 %v759_v39, %v749_v17  ;;  %v761_v44 = vpop.eup %760  ;;  %v662_v36 = vld [vmem:[%s972_s14 + $0x14] sm:$0xff]   ;;  %v490_v37 = vunpack.c.l.bf16 %v264_v34  ;;  %v263_v39 = vld [vmem:[%s972_s14] sm:$0xf] }
  0xdd   : > { %411 = vadd.xlane.f32.xlu2 %v410_v40  ;;  %v347_v43 = vsel %vm343_vm0, %v342_v41, 0.0  ;;  %v441_v49 = vmul.f32 %v761_v44, %v749_v17  ;;  %v496_v38 = vunpack.c.l.bf16 %v656_v35  ;;  %v668_v41 = vld [vmem:[%s972_s14 + $0x1c] sm:$0xf] }
  0xde   : > { %v380_v45 = vsel %vm343_vm0, %v376_v42, 0.0  ;;  %348 = vadd.xlane.f32.xlu0 %v347_v43  ;;  %v504_v42 = vunpack.c.l.bf16 %v662_v36 }
  0xdf   : > { %381 = vadd.xlane.f32.xlu1 %v380_v45  ;;  %v443_v52 = vsel %vm343_vm0, %v441_v49, 0.0  ;;  %v512_v49 = vunpack.c.l.bf16 %v668_v41 }
  0xe1   : > { %v763_v46 = vpop.eup %762 }
  0xe2   : > { %v765_v47 = vpop.eup %764  ;;  %v409_v48 = vmul.f32 %v763_v46, %v749_v17  ;;  %v489_v46 = vunpack.c.l.bf16 %v263_v39 }
  0xe3   : > { %v442_v50 = vmul.f32 %v765_v47, %v749_v17  ;;  %v495_v47 = vunpack.c.h.bf16 %v264_v34 }
  0xe4   : > { %v413_v51 = vsel %vm343_vm0, %v409_v48, 0.0 }
  0xe5   : > { %414 = vadd.xlane.f32.xlu2 %v413_v51  ;;  %v446_v53 = vsel %vm343_vm0, %v442_v50, 0.0 }
  0xe6   : > { %444 = vadd.xlane.f32.xlu0 %v443_v52 }
  0xe7   : > { %447 = vadd.xlane.f32.xlu1 %v446_v53  ;;  %v503_v53 = vunpack.c.h.bf16 %v656_v35 }
 0x149   : > { %v346_v54 = vpop.xlane.xlu0 %345 }
 0x14a   : > { %v379_v55 = vpop.xlane.xlu1 %378 }
 0x14b   : > { %v449_v59 = vmax.f32 %v346_v54, %v379_v55 }
 0x150   : > { %v412_v56 = vpop.xlane.xlu2 %411 }
 0x151   : > { %v349_v57 = vpop.xlane.xlu0 %348  ;;  %v451_v62 = vmax.f32 %v449_v59, %v412_v56  ;;  %v511_v59 = vunpack.c.h.bf16 %v662_v36 }
 0x152   : > { %v382_v58 = vpop.xlane.xlu1 %381 }
 0x153   : > { %v450_v60 = vmax.f32 %v349_v57, %v382_v58 }
 0x158   : > { %v415_v61 = vpop.xlane.xlu2 %414 }
 0x159   : > { %v452_v63 = vmax.f32 %v450_v60, %v415_v61  ;;  %v445_v0 = vpop.xlane.xlu0 %444 }
 0x15a   : > { %v448_v1 = vpop.xlane.xlu1 %447  ;;  %v453_v2 = vmax.f32 %v451_v62, %v445_v0 }
 0x15b   : > { %v454_v3 = vmax.f32 %v452_v63, %v448_v1 }
 0x15c   : > { %v455_v4 = vsub.f32 %v346_v54, %v453_v2  ;;  %v461_v8 = vsub.f32 %v379_v55, %v453_v2  ;;  %v467_v13 = vsub.f32 %v412_v56, %v453_v2  ;;  %v473_v16 = vsub.f32 %v445_v0, %v453_v2 }
 0x15d   : > { %v456_v5 = vsub.f32 %v349_v57, %v454_v3  ;;  %v462_v6 = vsub.f32 %v382_v58, %v454_v3  ;;  %v468_v7 = vsub.f32 %v415_v61, %v454_v3  ;;  %v474_v9 = vsub.f32 %v448_v1, %v454_v3 }
 0x15e   : > { %v457_v12 = vmul.f32 1.442695, %v455_v4  ;;  %v463_v15 = vmul.f32 1.442695, %v461_v8  ;;  %v469_v18 = vmul.f32 1.442695, %v467_v13 }
 0x15f   : > { %v459_v10 = vmul.f32 1.442695, %v456_v5  ;;  %v465_v11 = vmul.f32 1.442695, %v462_v6  ;;  %v471_v14 = vmul.f32 1.442695, %v468_v7 }
 0x160   : > { %v477_v17 = vmul.f32 1.442695, %v474_v9  ;;  %v475_v19 = vmul.f32 1.442695, %v473_v16 }
 0x161   : > { %766 = vpow2.f32 %v459_v10 }
 0x162   : > { %768 = vpow2.f32 %v465_v11 }
 0x163   : > { %770 = vpow2.f32 %v457_v12 }
 0x164   : > { %772 = vpow2.f32 %v471_v14 }
 0x165   : > { %774 = vpow2.f32 %v463_v15 }
 0x166   : > { %776 = vpow2.f32 %v477_v17 }
 0x167   : > { %v767_v20 = vpop.eup %766  ;;  %778 = vpow2.f32 %v469_v18 }
 0x168   : > { %v769_v21 = vpop.eup %768  ;;  %780 = vpow2.f32 %v475_v19 }
 0x169   : > { %v771_v22 = vpop.eup %770  ;;  %v480_v23 = vadd.f32 %v769_v21, %v767_v20 }
 0x16a   : > { %v773_v24 = vpop.eup %772 }
 0x16b   : > { %v775_v25 = vpop.eup %774  ;;  %v482_v26 = vadd.f32 %v773_v24, %v480_v23 }
 0x16c   : > { %v777_v27 = vpop.eup %776  ;;  %v479_v28 = vadd.f32 %v775_v25, %v771_v22 }
 0x16d   : > { %v779_v29 = vpop.eup %778  ;;  %v484_v30 = vadd.f32 %v777_v27, %v482_v26 }
 0x16e   : > { %v481_v31 = vadd.f32 %v779_v29, %v479_v28  ;;  %v781_v32 = vpop.eup %780 }
 0x16f   : > { %782 = vrcp.f32 %v484_v30 }
 0x170   : > { %v483_v33 = vadd.f32 %v781_v32, %v481_v31 }
 0x172   : > { %784 = vrcp.f32 %v483_v33 }
 0x175   : > { %v783_v40 = vpop.eup %782 }
 0x176   : > { %v488_v43 = vmul.f32 %v783_v40, %v767_v20  ;;  %v494_v44 = vmul.f32 %v783_v40, %v769_v21  ;;  %v502_v45 = vmul.f32 %v783_v40, %v773_v24  ;;  %v510_v52 = vmul.f32 %v783_v40, %v777_v27 }
 0x178   : > { %v785_v48 = vpop.eup %784  ;;  %v492_v50 = vmul.f32 %v490_v37, %v488_v43  ;;  %v498_v51 = vmul.f32 %v496_v38, %v494_v44  ;;  %v506_v58 = vmul.f32 %v504_v42, %v502_v45  ;;  %v514_v0 = vmul.f32 %v512_v49, %v510_v52 }
 0x179   : > { %v487_v54 = vmul.f32 %v785_v48, %v771_v22  ;;  %v493_v55 = vmul.f32 %v785_v48, %v775_v25  ;;  %v501_v56 = vmul.f32 %v785_v48, %v779_v29  ;;  %v509_v62 = vmul.f32 %v785_v48, %v781_v32 }
 0x17a   : > { %v500_v57 = vadd.f32 %v498_v51, %v492_v50 }
 0x17b   : > { %v491_v60 = vmul.f32 %v489_v46, %v487_v54  ;;  %v497_v61 = vmul.f32 %v495_v47, %v493_v55  ;;  %v505_v2 = vmul.f32 %v503_v53, %v501_v56  ;;  %v513_v5 = vmul.f32 %v511_v59, %v509_v62 }
 0x17c   : > { %v508_v63 = vadd.f32 %v506_v58, %v500_v57 }
 0x17d   : > { %v499_v1 = vadd.f32 %v497_v61, %v491_v60 }
 0x17e   : > { %v516_v3 = vadd.f32 %v514_v0, %v508_v63 }
 0x17f   : > { %v507_v4 = vadd.f32 %v505_v2, %v499_v1 }
 0x180   : > { %518 = vst [vmem:[%s242_s19 + $0x8] sm:$0xff] %v516_v3 }
 0x181   : > { %v515_v6 = vadd.f32 %v513_v5, %v507_v4 }
 0x183   : > { %517 = vst [vmem:[%s242_s19] sm:$0xff] %v515_v6 }
 0x184   : > { %813 = shalt.err (!%p810_p7)
}
 0x185   : > { %s860_s9 = smov 128   ;;  %s861_s20 = smov 8  }
 0x186   : > { %701 = dma.vmem_to_hbm [thread:$0]  (%p935_p9), %s533_s5, 256, %s535_s6, %s520_s7, %s860_s9, %s860_s9, %s861_s20  }
 0x187 PF: > { %p707_p8 = scmp.ge.s32.totalorder %s852_s18, 2  ;;  %s549_s22 = sand.u32 1, %s840_s15  }
 0x188   : > { %s550_s26 = scalar_lea.sflag [#allocation4], %s549_s22 }
 0x189   : > { %p704_p11 = pnand %p707_p8, %p939_p10 }
 0x18b   : > { %p705_p12 = pneg %p704_p11 }
 0x18d   : > { %835 = dma.done.wait (%p705_p12), %s550_s26, 256  }
 0x18e   : > { %837 = vsyncadd (%p705_p12), %s550_s26, 4294967040  ;;  %p17_p13 = scmp.ge.s32.totalorder %s912_s21, 6   ;;  %s1067_s15 = smov %s844_s16 }
 0x18f   : > { %s1068_s16 = smov %s848_s17  ;;  %s1069_s17 = smov %s924_s24 }
 0x190   : > { %s1070_s18 = smov %s912_s21  ;;  %19 = sbr.rel (!%p17_p13) target bundleno = 5 (0x5), region = 89 }
 0x195   :  { %556 = vsyncpa [#allocation3], 1 }
 0x196   :  { %558 = vsyncpa [#allocation3 + $0x1], 1 }
 0x197   :  { %559 = vsyncpa [#allocation4], 1 }
 0x198   :  { %561 = vsyncpa [#allocation4 + $0x1], 1 }

</bundles_post_ra>
